<compile_context>
chip_gen: v7x
topology: tpu7x:2x2x1
jax: 0.10.0
libtpu: 0.0.40
codegen_flags: <defaults>
</compile_context>

<pallas_src>
import functools

import jax
import jax.numpy as jnp
from jax.experimental import pallas as pl
from jax.experimental.pallas import tpu as pltpu


def _round_up(x, m):
    return (x + m - 1) // m * m


def _lstm_chunk_kernel(
    x_ref,      # (Tc*Bp, I)   this chunk's time-major, batch-padded inputs
    wih_ref,    # (I, 4H)      W_ih^T
    whh_ref,    # (H, 4H)      W_hh^T
    b_ref,      # (1, 4H)      b_ih + b_hh (f32)
    wlin_ref,   # (H, O)       W_linear^T
    blin_ref,   # (1, O)       b_linear (f32)
    out_ref,    # (Bp, O)      predictions (resident across the time grid)
    xp_sc,      # (Tc*Bp, 4H)  f32 scratch: chunk gate pre-activations
    h_sc,       # (Bp, H)      f32 scratch: hidden state, carried across chunks
    c_sc,       # (Bp, H)      f32 scratch: cell state,   carried across chunks
    *,
    seq_len,    # real (unpadded) number of timesteps
    t_chunk,    # timesteps per grid step
    unroll,
):
    chunk = pl.program_id(0)
    last_chunk = pl.num_programs(0) - 1
    Bp, H = h_sc.shape

    @pl.when(chunk == 0)
    def _init():
        h_sc[...] = jnp.zeros_like(h_sc)
        c_sc[...] = jnp.zeros_like(c_sc)

    # (1) cuDNN-style time-parallel input projection for THIS chunk only:
    #     one MXU matmul (M = Tc*Bp, K = I) + fused bias, f32 accumulation.
    xp_sc[...] = (
        jnp.dot(x_ref[...], wih_ref[...], preferred_element_type=jnp.float32)
        + b_ref[...]
    )

    whh = whh_ref[...]  # load recurrent weights once per chunk
    needs_mask = (seq_len % t_chunk) != 0

    def sigmoid_via_tanh(v):
        # sigmoid(x) = 0.5*tanh(0.5*x) + 0.5 : one EUP op, no divide on the
        # serial per-step dependency chain.
        return 0.5 * jnp.tanh(0.5 * v) + 0.5

    def step(t, carry):
        h, c = carry
        row = pl.multiple_of(t * Bp, Bp)  # sublane-aligned dynamic slice
        gates = xp_sc[pl.ds(row, Bp), :] + jnp.dot(
            h.astype(whh.dtype), whh, preferred_element_type=jnp.float32
        )
        # PyTorch gate order: i, f, g, o.  Gate/state math stays f32 (v5e-safe).
        i_g = sigmoid_via_tanh(gates[:, 0 * H:1 * H])
        f_g = sigmoid_via_tanh(gates[:, 1 * H:2 * H])
        g_g = jnp.tanh(gates[:, 2 * H:3 * H])
        o_g = sigmoid_via_tanh(gates[:, 3 * H:4 * H])
        c_new = f_g * c + i_g * g_g
        h_new = o_g * jnp.tanh(c_new)
        if needs_mask:
            # Padded trailing timesteps (time padded up to a chunk multiple)
            # must not update the state.
            keep = ((chunk * t_chunk + t) < seq_len).astype(jnp.float32)
            h_new = keep * h_new + (1.0 - keep) * h
            c_new = keep * c_new + (1.0 - keep) * c
        return h_new, c_new

    h0 = h_sc[...]
    c0 = c_sc[...]
    h_last, c_last = jax.lax.fori_loop(0, t_chunk, step, (h0, c0), unroll=unroll)
    h_sc[...] = h_last
    c_sc[...] = c_last

    # (3) Linear head on the final hidden state, once, on the last chunk.
    @pl.when(chunk == last_chunk)
    def _head():
        out_ref[...] = (
            jnp.dot(h_last.astype(wlin_ref.dtype), wlin_ref[...],
                    preferred_element_type=jnp.float32)
            + blin_ref[...]
        )


def prepare_params(params, *, matmul_dtype=jnp.bfloat16):
    """One-time parameter prep (outside the jitted forward).

    Transposes weights and fuses the two LSTM biases.  matmul_dtype=bfloat16 by
    default (bf16-native MXUs on v6e/v7x, ~2-3x throughput, half the weight
    VMEM/DMA); accumulation and all gate/state math stay f32.  Pass
    matmul_dtype=jnp.float32 for PyTorch-tight numerics.
    """
    w_ih = jnp.asarray(params["w_ih"], jnp.float32)    # (4H, I)
    w_hh = jnp.asarray(params["w_hh"], jnp.float32)    # (4H, H)
    b_ih = jnp.asarray(params["b_ih"], jnp.float32)    # (4H,)
    b_hh = jnp.asarray(params["b_hh"], jnp.float32)    # (4H,)
    w_lin = jnp.asarray(params["w_lin"], jnp.float32)  # (O, H)
    b_lin = jnp.asarray(params["b_lin"], jnp.float32)  # (O,)
    O = w_lin.shape[0]
    return {
        "w_ih_t": w_ih.T.astype(matmul_dtype),   # (I, 4H)
        "w_hh_t": w_hh.T.astype(matmul_dtype),   # (H, 4H)
        "b": (b_ih + b_hh).reshape(1, -1),       # (1, 4H) f32
        "w_lin_t": w_lin.T.astype(matmul_dtype), # (H, O)
        "b_lin": b_lin.reshape(1, O),            # (1, O) f32
    }


@functools.partial(jax.jit, static_argnames=("t_chunk",))
def lstm_model_forward(input_seq, prepped, *, t_chunk=16):
    """Forward of LSTMModel: linear(lstm(input_seq)[:, -1])."""
    B, S, I = input_seq.shape
    wih = prepped["w_ih_t"]
    whh = prepped["w_hh_t"]
    bias = prepped["b"]
    wlin = prepped["w_lin_t"]
    blin = prepped["b_lin"]
    H = whh.shape[0]
    O = wlin.shape[1]
    Bp = _round_up(B, 8)              # full f32 sublanes

    Tc = min(t_chunk, S)              # timesteps per grid step
    Sp = _round_up(S, Tc)
    n_chunks = Sp // Tc

    # (B,S,I) -> time-major, batch/time padded, flattened (Sp*Bp, I) so each
    # grid step's (Tc*Bp, I) input block is one contiguous, sublane-aligned DMA.
    # TODO(synk): fold this transpose/pad into the BlockSpec once index_maps can
    # transpose; at these sizes it is a tiny one-time XLA op.
    x = jnp.transpose(input_seq.astype(jnp.float32), (1, 0, 2))
    x = jnp.pad(x, ((0, Sp - S), (0, Bp - B), (0, 0)))
    x2d = x.reshape(Sp * Bp, I).astype(wih.dtype)

    ws = jnp.dtype(wih.dtype).itemsize
    # Scoped-VMEM request sized from the actual buffers (lane/sublane padded),
    # with ~2x headroom; stays well inside v7x's 64 MiB for sane chunk sizes.
    vmem_bytes = (
        2 * Tc * Bp * max(_round_up(I, 128), 128) * ws          # X chunk, 2-buf
        + Tc * Bp * _round_up(4 * H, 128) * 4                   # xp scratch
        + 2 * Bp * _round_up(H, 128) * 4                        # h, c
        + (_round_up(I, 8) + _round_up(H, 8) + 8) * _round_up(4 * H, 128) * 4
        + (_round_up(H, 8) + 8) * 128 * 4                        # wlin, blin
        + 2 * Bp * 128 * 4                                       # out, 2-buf
    )
    vmem_limit = max(8 << 20, min(2 * int(vmem_bytes) + (2 << 20), 64 << 20))

    cost = pl.CostEstimate(
        flops=int(2 * Sp * Bp * 4 * H * (I + H) + 2 * Bp * H * O
                  + 10 * Sp * Bp * H),
        transcendentals=int(5 * Sp * Bp * H),
        bytes_accessed=int(x2d.size * ws
                           + (wih.size + whh.size + wlin.size) * ws
                           + (bias.size + blin.size + Bp * O) * 4),
    )

    kernel = functools.partial(
        _lstm_chunk_kernel, seq_len=S, t_chunk=Tc, unroll=min(Tc, 8)
    )

    out_p = pl.pallas_call(
        kernel,
        out_shape=jax.ShapeDtypeStruct((Bp, O), jnp.float32),
        grid=(n_chunks,),
        in_specs=[
            pl.BlockSpec((Tc * Bp, I), lambda t: (t, 0)),   # streamed X chunks
            pl.BlockSpec((I, 4 * H), lambda t: (0, 0)),     # resident weights
            pl.BlockSpec((H, 4 * H), lambda t: (0, 0)),
            pl.BlockSpec((1, 4 * H), lambda t: (0, 0)),
            pl.BlockSpec((H, O), lambda t: (0, 0)),
            pl.BlockSpec((1, O), lambda t: (0, 0)),
        ],
        out_specs=pl.BlockSpec((Bp, O), lambda t: (0, 0)),  # resident output
        scratch_shapes=[
            pltpu.VMEM((Tc * Bp, 4 * H), jnp.float32),      # chunk pre-acts
            pltpu.VMEM((Bp, H), jnp.float32),               # h (carried)
            pltpu.VMEM((Bp, H), jnp.float32),               # c (carried)
        ],
        compiler_params=pltpu.CompilerParams(
            dimension_semantics=("arbitrary",),             # serial time chunks
            vmem_limit_bytes=vmem_limit,
        ),
        cost_estimate=cost,
    )(x2d, wih, whh, bias, wlin, blin)

    # TODO(synk): for large batches on v7x, add a leading batch-tile grid axis
    # marked "parallel" so the 2 TensorCores each run an independent shard.
    return out_p[:B]


def init_params(key, input_size, hidden_size, output_size):
    """Deterministic init mimicking PyTorch's uniform(-1/sqrt(H), 1/sqrt(H))."""
    ks = jax.random.split(key, 6)
    bound = 1.0 / jnp.sqrt(jnp.float32(hidden_size))
    u = lambda k, shape: jax.random.uniform(
        k, shape, dtype=jnp.float32, minval=-bound, maxval=bound
    )
    return {
        "w_ih": u(ks[0], (4 * hidden_size, input_size)),
        "w_hh": u(ks[1], (4 * hidden_size, hidden_size)),
        "b_ih": u(ks[2], (4 * hidden_size,)),
        "b_hh": u(ks[3], (4 * hidden_size,)),
        "w_lin": u(ks[4], (output_size, hidden_size)),
        "b_lin": u(ks[5], (output_size,)),
    }


def reference_forward(input_seq, params, hidden_size):
    """Pure-JAX reference (matches torch.nn.LSTM + Linear semantics)."""
    B, S, I = input_seq.shape
    H = hidden_size
    wih_t = params["w_ih"].T
    whh_t = params["w_hh"].T
    b = params["b_ih"] + params["b_hh"]

    def step(carry, x_t):
        h, c = carry
        gates = x_t @ wih_t + h @ whh_t + b
        i = jax.nn.sigmoid(gates[:, 0 * H:1 * H])
        f = jax.nn.sigmoid(gates[:, 1 * H:2 * H])
        g = jnp.tanh(gates[:, 2 * H:3 * H])
        o = jax.nn.sigmoid(gates[:, 3 * H:4 * H])
        c = f * c + i * g
        h = o * jnp.tanh(c)
        return (h, c), None

    h0 = jnp.zeros((B, H), jnp.float32)
    c0 = jnp.zeros((B, H), jnp.float32)
    (h_last, _), _ = jax.lax.scan(step, (h0, c0),
                                  jnp.transpose(input_seq, (1, 0, 2)))
    return h_last @ params["w_lin"].T + params["b_lin"]


if __name__ == "__main__":
    batch, seq_len = 2, 8
    input_size, hidden_size, output_size = 4, 32, 1

    key = jax.random.PRNGKey(0)
    k_x, k_p = jax.random.split(key)
    x = jax.random.normal(k_x, (batch, seq_len, input_size), dtype=jnp.float32)
    params = init_params(k_p, input_size, hidden_size, output_size)

    ref = reference_forward(x, params, hidden_size)

    # f32 matmul weights: tight vs. the PyTorch-semantics reference.
    prepped_f32 = prepare_params(params, matmul_dtype=jnp.float32)
    out = jax.block_until_ready(lstm_model_forward(x, prepped_f32, t_chunk=4))
    assert out.shape == (batch, output_size)
    assert jnp.allclose(out, ref, atol=1e-5, rtol=1e-5), (out, ref)

    # Remainder-masked chunking path (S % t_chunk != 0) must match too.
    out_rem = jax.block_until_ready(lstm_model_forward(x, prepped_f32, t_chunk=3))
    assert jnp.allclose(out_rem, ref, atol=1e-5, rtol=1e-5), (out_rem, ref)

    # Default bf16 matmul operands (f32 accumulation / gate math): the deliberate
    # numeric deviation from PyTorch f32 is documented by the looser tolerance.
    prepped_bf16 = prepare_params(params)
    out_bf16 = jax.block_until_ready(lstm_model_forward(x, prepped_bf16, t_chunk=4))
    assert jnp.allclose(out_bf16, ref, atol=1e-1, rtol=1e-1), (out_bf16, ref)

    print("KERNEL_OK")
</pallas_src>

<mosaic_0001>
module attributes {stable_mosaic.version = 11 : i64} {
  func.func @_lstm_chunk_kernel(%arg0: i32, %arg1: memref<32x4xf32, #tpu.memory_space<vmem>>, %arg2: memref<4x128xf32, #tpu.memory_space<vmem>>, %arg3: memref<32x128xf32, #tpu.memory_space<vmem>>, %arg4: memref<1x128xf32, #tpu.memory_space<vmem>>, %arg5: memref<32x1xf32, #tpu.memory_space<vmem>>, %arg6: memref<1x1xf32, #tpu.memory_space<vmem>>, %arg7: memref<8x1xf32, #tpu.memory_space<vmem>>, %arg8: memref<32x128xf32, #tpu.memory_space<vmem>>, %arg9: memref<8x32xf32, #tpu.memory_space<vmem>>, %arg10: memref<8x32xf32, #tpu.memory_space<vmem>>) attributes {dimension_semantics = [#tpu.dimension_semantics<arbitrary>], iteration_bounds = array<i64: 2>, scalar_prefetch = 0 : i64, scratch_operands = 3 : i64, tpu.core_type = #tpu.core_type<tc>, window_params = [{transform_indices = @transform_0, window_bounds = array<i64: 32, 4>}, {pipeline_mode = #tpu.pipeline_mode<synchronous>, transform_indices = @transform_1, window_bounds = array<i64: 4, 128>}, {pipeline_mode = #tpu.pipeline_mode<synchronous>, transform_indices = @transform_2, window_bounds = array<i64: 32, 128>}, {pipeline_mode = #tpu.pipeline_mode<synchronous>, transform_indices = @transform_3, window_bounds = array<i64: 1, 128>}, {pipeline_mode = #tpu.pipeline_mode<synchronous>, transform_indices = @transform_4, window_bounds = array<i64: 32, 1>}, {pipeline_mode = #tpu.pipeline_mode<synchronous>, transform_indices = @transform_5, window_bounds = array<i64: 1, 1>}, {pipeline_mode = #tpu.pipeline_mode<synchronous>, transform_indices = @transform_6, window_bounds = array<i64: 8, 1>}]} {
    %c0_i32 = arith.constant 0 : i32
    %0 = arith.cmpi eq, %arg0, %c0_i32 : i32
    %1 = arith.extui %0 : i1 to i32
    %c0_i32_0 = arith.constant 0 : i32
    %2 = arith.cmpi ne, %1, %c0_i32_0 : i32
    scf.if %2 {
      %cst_68 = arith.constant 0.000000e+00 : f32
      %166 = vector.broadcast %cst_68 : f32 to vector<8x32xf32>
      %c0_69 = arith.constant 0 : index
      %c0_70 = arith.constant 0 : index
      %167 = vector.load %arg9[%c0_69, %c0_70] : memref<8x32xf32, #tpu.memory_space<vmem>>, vector<8x32xf32>
      tpu.vector_store %arg9[%c0_69, %c0_70], %166 {strides = array<i32>} : memref<8x32xf32, #tpu.memory_space<vmem>>, vector<8x32xf32>,
      %cst_71 = arith.constant 0.000000e+00 : f32
      %168 = vector.broadcast %cst_71 : f32 to vector<8x32xf32>
      %c0_72 = arith.constant 0 : index
      %c0_73 = arith.constant 0 : index
      %169 = vector.load %arg10[%c0_72, %c0_73] : memref<8x32xf32, #tpu.memory_space<vmem>>, vector<8x32xf32>
      tpu.vector_store %arg10[%c0_72, %c0_73], %168 {strides = array<i32>} : memref<8x32xf32, #tpu.memory_space<vmem>>, vector<8x32xf32>,
    } else {
    }
    %c0 = arith.constant 0 : index
    %c0_1 = arith.constant 0 : index
    %3 = vector.load %arg1[%c0, %c0_1] : memref<32x4xf32, #tpu.memory_space<vmem>>, vector<32x4xf32>
    %c0_2 = arith.constant 0 : index
    %c0_3 = arith.constant 0 : index
    %4 = vector.load %arg2[%c0_2, %c0_3] : memref<4x128xf32, #tpu.memory_space<vmem>>, vector<4x128xf32>
    %cst = arith.constant dense<0.000000e+00> : vector<32x128xf32>
    %5 = tpu.matmul %3, %4, %cst {dimension_numbers = #tpu.dot_dimension_numbers<[1], [0], [0], [1], [0, 0, 1, 1], [], []>} : vector<32x4xf32>, vector<4x128xf32>, vector<32x128xf32> -> vector<32x128xf32>
    %c0_4 = arith.constant 0 : index
    %c0_5 = arith.constant 0 : index
    %6 = vector.load %arg4[%c0_4, %c0_5] : memref<1x128xf32, #tpu.memory_space<vmem>>, vector<1x128xf32>
    %7 = vector.broadcast %6 : vector<1x128xf32> to vector<32x128xf32>
    %8 = arith.addf %5, %7 : vector<32x128xf32>
    %c0_6 = arith.constant 0 : index
    %c0_7 = arith.constant 0 : index
    %9 = vector.load %arg8[%c0_6, %c0_7] : memref<32x128xf32, #tpu.memory_space<vmem>>, vector<32x128xf32>
    tpu.vector_store %arg8[%c0_6, %c0_7], %8 {strides = array<i32>} : memref<32x128xf32, #tpu.memory_space<vmem>>, vector<32x128xf32>,
    %c0_8 = arith.constant 0 : index
    %c0_9 = arith.constant 0 : index
    %10 = vector.load %arg3[%c0_8, %c0_9] : memref<32x128xf32, #tpu.memory_space<vmem>>, vector<32x128xf32>
    %c0_10 = arith.constant 0 : index
    %c0_11 = arith.constant 0 : index
    %11 = vector.load %arg9[%c0_10, %c0_11] : memref<8x32xf32, #tpu.memory_space<vmem>>, vector<8x32xf32>
    %c0_12 = arith.constant 0 : index
    %c0_13 = arith.constant 0 : index
    %12 = vector.load %arg10[%c0_12, %c0_13] : memref<8x32xf32, #tpu.memory_space<vmem>>, vector<8x32xf32>
    %c0_i32_14 = arith.constant 0 : i32
    %c8_i32 = arith.constant 8 : i32
    %13 = arith.muli %c0_i32_14, %c8_i32 : i32
    %14 = tpu.assume_multiple %13, 8 : i32
    %15 = arith.index_cast %14 : i32 to index
    %c0_15 = arith.constant 0 : index
    %16 = vector.load %arg8[%15, %c0_15] : memref<32x128xf32, #tpu.memory_space<vmem>>, vector<8x128xf32>
    %cst_16 = arith.constant dense<0.000000e+00> : vector<8x128xf32>
    %17 = tpu.matmul %11, %10, %cst_16 {dimension_numbers = #tpu.dot_dimension_numbers<[1], [0], [0], [1], [0, 0, 1, 1], [], []>} : vector<8x32xf32>, vector<32x128xf32>, vector<8x128xf32> -> vector<8x128xf32>
    %18 = arith.addf %16, %17 : vector<8x128xf32>
    %19 = vector.extract_strided_slice %18 {offsets = [0, 0], sizes = [8, 32], strides = [1, 1]} : vector<8x128xf32> to vector<8x32xf32>
    %cst_17 = arith.constant 5.000000e-01 : f32
    %20 = vector.broadcast %cst_17 : f32 to vector<8x32xf32>
    %21 = arith.mulf %20, %19 : vector<8x32xf32>
    %22 = math.tanh %21 : vector<8x32xf32>
    %cst_18 = arith.constant 5.000000e-01 : f32
    %23 = vector.broadcast %cst_18 : f32 to vector<8x32xf32>
    %24 = arith.mulf %23, %22 : vector<8x32xf32>
    %cst_19 = arith.constant 5.000000e-01 : f32
    %25 = vector.broadcast %cst_19 : f32 to vector<8x32xf32>
    %26 = arith.addf %24, %25 : vector<8x32xf32>
    %27 = vector.extract_strided_slice %18 {offsets = [0, 32], sizes = [8, 32], strides = [1, 1]} : vector<8x128xf32> to vector<8x32xf32>
    %cst_20 = arith.constant 5.000000e-01 : f32
    %28 = vector.broadcast %cst_20 : f32 to vector<8x32xf32>
    %29 = arith.mulf %28, %27 : vector<8x32xf32>
    %30 = math.tanh %29 : vector<8x32xf32>
    %cst_21 = arith.constant 5.000000e-01 : f32
    %31 = vector.broadcast %cst_21 : f32 to vector<8x32xf32>
    %32 = arith.mulf %31, %30 : vector<8x32xf32>
    %cst_22 = arith.constant 5.000000e-01 : f32
    %33 = vector.broadcast %cst_22 : f32 to vector<8x32xf32>
    %34 = arith.addf %32, %33 : vector<8x32xf32>
    %35 = vector.extract_strided_slice %18 {offsets = [0, 64], sizes = [8, 32], strides = [1, 1]} : vector<8x128xf32> to vector<8x32xf32>
    %36 = math.tanh %35 : vector<8x32xf32>
    %37 = vector.extract_strided_slice %18 {offsets = [0, 96], sizes = [8, 32], strides = [1, 1]} : vector<8x128xf32> to vector<8x32xf32>
    %cst_23 = arith.constant 5.000000e-01 : f32
    %38 = vector.broadcast %cst_23 : f32 to vector<8x32xf32>
    %39 = arith.mulf %38, %37 : vector<8x32xf32>
    %40 = math.tanh %39 : vector<8x32xf32>
    %cst_24 = arith.constant 5.000000e-01 : f32
    %41 = vector.broadcast %cst_24 : f32 to vector<8x32xf32>
    %42 = arith.mulf %41, %40 : vector<8x32xf32>
    %cst_25 = arith.constant 5.000000e-01 : f32
    %43 = vector.broadcast %cst_25 : f32 to vector<8x32xf32>
    %44 = arith.addf %42, %43 : vector<8x32xf32>
    %45 = arith.mulf %34, %12 : vector<8x32xf32>
    %46 = arith.mulf %26, %36 : vector<8x32xf32>
    %47 = arith.addf %45, %46 : vector<8x32xf32>
    %48 = math.tanh %47 : vector<8x32xf32>
    %49 = arith.mulf %44, %48 : vector<8x32xf32>
    %c1_i32 = arith.constant 1 : i32
    %c8_i32_26 = arith.constant 8 : i32
    %50 = arith.muli %c1_i32, %c8_i32_26 : i32
    %51 = tpu.assume_multiple %50, 8 : i32
    %52 = arith.index_cast %51 : i32 to index
    %c0_27 = arith.constant 0 : index
    %53 = vector.load %arg8[%52, %c0_27] : memref<32x128xf32, #tpu.memory_space<vmem>>, vector<8x128xf32>
    %cst_28 = arith.constant dense<0.000000e+00> : vector<8x128xf32>
    %54 = tpu.matmul %49, %10, %cst_28 {dimension_numbers = #tpu.dot_dimension_numbers<[1], [0], [0], [1], [0, 0, 1, 1], [], []>} : vector<8x32xf32>, vector<32x128xf32>, vector<8x128xf32> -> vector<8x128xf32>
    %55 = arith.addf %53, %54 : vector<8x128xf32>
    %56 = vector.extract_strided_slice %55 {offsets = [0, 0], sizes = [8, 32], strides = [1, 1]} : vector<8x128xf32> to vector<8x32xf32>
    %cst_29 = arith.constant 5.000000e-01 : f32
    %57 = vector.broadcast %cst_29 : f32 to vector<8x32xf32>
    %58 = arith.mulf %57, %56 : vector<8x32xf32>
    %59 = math.tanh %58 : vector<8x32xf32>
    %cst_30 = arith.constant 5.000000e-01 : f32
    %60 = vector.broadcast %cst_30 : f32 to vector<8x32xf32>
    %61 = arith.mulf %60, %59 : vector<8x32xf32>
    %cst_31 = arith.constant 5.000000e-01 : f32
    %62 = vector.broadcast %cst_31 : f32 to vector<8x32xf32>
    %63 = arith.addf %61, %62 : vector<8x32xf32>
    %64 = vector.extract_strided_slice %55 {offsets = [0, 32], sizes = [8, 32], strides = [1, 1]} : vector<8x128xf32> to vector<8x32xf32>
    %cst_32 = arith.constant 5.000000e-01 : f32
    %65 = vector.broadcast %cst_32 : f32 to vector<8x32xf32>
    %66 = arith.mulf %65, %64 : vector<8x32xf32>
    %67 = math.tanh %66 : vector<8x32xf32>
    %cst_33 = arith.constant 5.000000e-01 : f32
    %68 = vector.broadcast %cst_33 : f32 to vector<8x32xf32>
    %69 = arith.mulf %68, %67 : vector<8x32xf32>
    %cst_34 = arith.constant 5.000000e-01 : f32
    %70 = vector.broadcast %cst_34 : f32 to vector<8x32xf32>
    %71 = arith.addf %69, %70 : vector<8x32xf32>
    %72 = vector.extract_strided_slice %55 {offsets = [0, 64], sizes = [8, 32], strides = [1, 1]} : vector<8x128xf32> to vector<8x32xf32>
    %73 = math.tanh %72 : vector<8x32xf32>
    %74 = vector.extract_strided_slice %55 {offsets = [0, 96], sizes = [8, 32], strides = [1, 1]} : vector<8x128xf32> to vector<8x32xf32>
    %cst_35 = arith.constant 5.000000e-01 : f32
    %75 = vector.broadcast %cst_35 : f32 to vector<8x32xf32>
    %76 = arith.mulf %75, %74 : vector<8x32xf32>
    %77 = math.tanh %76 : vector<8x32xf32>
    %cst_36 = arith.constant 5.000000e-01 : f32
    %78 = vector.broadcast %cst_36 : f32 to vector<8x32xf32>
    %79 = arith.mulf %78, %77 : vector<8x32xf32>
    %cst_37 = arith.constant 5.000000e-01 : f32
    %80 = vector.broadcast %cst_37 : f32 to vector<8x32xf32>
    %81 = arith.addf %79, %80 : vector<8x32xf32>
    %82 = arith.mulf %71, %47 : vector<8x32xf32>
    %83 = arith.mulf %63, %73 : vector<8x32xf32>
    %84 = arith.addf %82, %83 : vector<8x32xf32>
    %85 = math.tanh %84 : vector<8x32xf32>
    %86 = arith.mulf %81, %85 : vector<8x32xf32>
    %c2_i32 = arith.constant 2 : i32
    %c8_i32_38 = arith.constant 8 : i32
    %87 = arith.muli %c2_i32, %c8_i32_38 : i32
    %88 = tpu.assume_multiple %87, 8 : i32
    %89 = arith.index_cast %88 : i32 to index
    %c0_39 = arith.constant 0 : index
    %90 = vector.load %arg8[%89, %c0_39] : memref<32x128xf32, #tpu.memory_space<vmem>>, vector<8x128xf32>
    %cst_40 = arith.constant dense<0.000000e+00> : vector<8x128xf32>
    %91 = tpu.matmul %86, %10, %cst_40 {dimension_numbers = #tpu.dot_dimension_numbers<[1], [0], [0], [1], [0, 0, 1, 1], [], []>} : vector<8x32xf32>, vector<32x128xf32>, vector<8x128xf32> -> vector<8x128xf32>
    %92 = arith.addf %90, %91 : vector<8x128xf32>
    %93 = vector.extract_strided_slice %92 {offsets = [0, 0], sizes = [8, 32], strides = [1, 1]} : vector<8x128xf32> to vector<8x32xf32>
    %cst_41 = arith.constant 5.000000e-01 : f32
    %94 = vector.broadcast %cst_41 : f32 to vector<8x32xf32>
    %95 = arith.mulf %94, %93 : vector<8x32xf32>
    %96 = math.tanh %95 : vector<8x32xf32>
    %cst_42 = arith.constant 5.000000e-01 : f32
    %97 = vector.broadcast %cst_42 : f32 to vector<8x32xf32>
    %98 = arith.mulf %97, %96 : vector<8x32xf32>
    %cst_43 = arith.constant 5.000000e-01 : f32
    %99 = vector.broadcast %cst_43 : f32 to vector<8x32xf32>
    %100 = arith.addf %98, %99 : vector<8x32xf32>
    %101 = vector.extract_strided_slice %92 {offsets = [0, 32], sizes = [8, 32], strides = [1, 1]} : vector<8x128xf32> to vector<8x32xf32>
    %cst_44 = arith.constant 5.000000e-01 : f32
    %102 = vector.broadcast %cst_44 : f32 to vector<8x32xf32>
    %103 = arith.mulf %102, %101 : vector<8x32xf32>
    %104 = math.tanh %103 : vector<8x32xf32>
    %cst_45 = arith.constant 5.000000e-01 : f32
    %105 = vector.broadcast %cst_45 : f32 to vector<8x32xf32>
    %106 = arith.mulf %105, %104 : vector<8x32xf32>
    %cst_46 = arith.constant 5.000000e-01 : f32
    %107 = vector.broadcast %cst_46 : f32 to vector<8x32xf32>
    %108 = arith.addf %106, %107 : vector<8x32xf32>
    %109 = vector.extract_strided_slice %92 {offsets = [0, 64], sizes = [8, 32], strides = [1, 1]} : vector<8x128xf32> to vector<8x32xf32>
    %110 = math.tanh %109 : vector<8x32xf32>
    %111 = vector.extract_strided_slice %92 {offsets = [0, 96], sizes = [8, 32], strides = [1, 1]} : vector<8x128xf32> to vector<8x32xf32>
    %cst_47 = arith.constant 5.000000e-01 : f32
    %112 = vector.broadcast %cst_47 : f32 to vector<8x32xf32>
    %113 = arith.mulf %112, %111 : vector<8x32xf32>
    %114 = math.tanh %113 : vector<8x32xf32>
    %cst_48 = arith.constant 5.000000e-01 : f32
    %115 = vector.broadcast %cst_48 : f32 to vector<8x32xf32>
    %116 = arith.mulf %115, %114 : vector<8x32xf32>
    %cst_49 = arith.constant 5.000000e-01 : f32
    %117 = vector.broadcast %cst_49 : f32 to vector<8x32xf32>
    %118 = arith.addf %116, %117 : vector<8x32xf32>
    %119 = arith.mulf %108, %84 : vector<8x32xf32>
    %120 = arith.mulf %100, %110 : vector<8x32xf32>
    %121 = arith.addf %119, %120 : vector<8x32xf32>
    %122 = math.tanh %121 : vector<8x32xf32>
    %123 = arith.mulf %118, %122 : vector<8x32xf32>
    %c3_i32 = arith.constant 3 : i32
    %c8_i32_50 = arith.constant 8 : i32
    %124 = arith.muli %c3_i32, %c8_i32_50 : i32
    %125 = tpu.assume_multiple %124, 8 : i32
    %126 = arith.index_cast %125 : i32 to index
    %c0_51 = arith.constant 0 : index
    %127 = vector.load %arg8[%126, %c0_51] : memref<32x128xf32, #tpu.memory_space<vmem>>, vector<8x128xf32>
    %cst_52 = arith.constant dense<0.000000e+00> : vector<8x128xf32>
    %128 = tpu.matmul %123, %10, %cst_52 {dimension_numbers = #tpu.dot_dimension_numbers<[1], [0], [0], [1], [0, 0, 1, 1], [], []>} : vector<8x32xf32>, vector<32x128xf32>, vector<8x128xf32> -> vector<8x128xf32>
    %129 = arith.addf %127, %128 : vector<8x128xf32>
    %130 = vector.extract_strided_slice %129 {offsets = [0, 0], sizes = [8, 32], strides = [1, 1]} : vector<8x128xf32> to vector<8x32xf32>
    %cst_53 = arith.constant 5.000000e-01 : f32
    %131 = vector.broadcast %cst_53 : f32 to vector<8x32xf32>
    %132 = arith.mulf %131, %130 : vector<8x32xf32>
    %133 = math.tanh %132 : vector<8x32xf32>
    %cst_54 = arith.constant 5.000000e-01 : f32
    %134 = vector.broadcast %cst_54 : f32 to vector<8x32xf32>
    %135 = arith.mulf %134, %133 : vector<8x32xf32>
    %cst_55 = arith.constant 5.000000e-01 : f32
    %136 = vector.broadcast %cst_55 : f32 to vector<8x32xf32>
    %137 = arith.addf %135, %136 : vector<8x32xf32>
    %138 = vector.extract_strided_slice %129 {offsets = [0, 32], sizes = [8, 32], strides = [1, 1]} : vector<8x128xf32> to vector<8x32xf32>
    %cst_56 = arith.constant 5.000000e-01 : f32
    %139 = vector.broadcast %cst_56 : f32 to vector<8x32xf32>
    %140 = arith.mulf %139, %138 : vector<8x32xf32>
    %141 = math.tanh %140 : vector<8x32xf32>
    %cst_57 = arith.constant 5.000000e-01 : f32
    %142 = vector.broadcast %cst_57 : f32 to vector<8x32xf32>
    %143 = arith.mulf %142, %141 : vector<8x32xf32>
    %cst_58 = arith.constant 5.000000e-01 : f32
    %144 = vector.broadcast %cst_58 : f32 to vector<8x32xf32>
    %145 = arith.addf %143, %144 : vector<8x32xf32>
    %146 = vector.extract_strided_slice %129 {offsets = [0, 64], sizes = [8, 32], strides = [1, 1]} : vector<8x128xf32> to vector<8x32xf32>
    %147 = math.tanh %146 : vector<8x32xf32>
    %148 = vector.extract_strided_slice %129 {offsets = [0, 96], sizes = [8, 32], strides = [1, 1]} : vector<8x128xf32> to vector<8x32xf32>
    %cst_59 = arith.constant 5.000000e-01 : f32
    %149 = vector.broadcast %cst_59 : f32 to vector<8x32xf32>
    %150 = arith.mulf %149, %148 : vector<8x32xf32>
    %151 = math.tanh %150 : vector<8x32xf32>
    %cst_60 = arith.constant 5.000000e-01 : f32
    %152 = vector.broadcast %cst_60 : f32 to vector<8x32xf32>
    %153 = arith.mulf %152, %151 : vector<8x32xf32>
    %cst_61 = arith.constant 5.000000e-01 : f32
    %154 = vector.broadcast %cst_61 : f32 to vector<8x32xf32>
    %155 = arith.addf %153, %154 : vector<8x32xf32>
    %156 = arith.mulf %145, %121 : vector<8x32xf32>
    %157 = arith.mulf %137, %147 : vector<8x32xf32>
    %158 = arith.addf %156, %157 : vector<8x32xf32>
    %159 = math.tanh %158 : vector<8x32xf32>
    %160 = arith.mulf %155, %159 : vector<8x32xf32>
    %c4_i32 = arith.constant 4 : i32
    %c0_62 = arith.constant 0 : index
    %c0_63 = arith.constant 0 : index
    %161 = vector.load %arg9[%c0_62, %c0_63] : memref<8x32xf32, #tpu.memory_space<vmem>>, vector<8x32xf32>
    tpu.vector_store %arg9[%c0_62, %c0_63], %160 {strides = array<i32>} : memref<8x32xf32, #tpu.memory_space<vmem>>, vector<8x32xf32>,
    %c0_64 = arith.constant 0 : index
    %c0_65 = arith.constant 0 : index
    %162 = vector.load %arg10[%c0_64, %c0_65] : memref<8x32xf32, #tpu.memory_space<vmem>>, vector<8x32xf32>
    tpu.vector_store %arg10[%c0_64, %c0_65], %158 {strides = array<i32>} : memref<8x32xf32, #tpu.memory_space<vmem>>, vector<8x32xf32>,
    %c1_i32_66 = arith.constant 1 : i32
    %163 = arith.cmpi eq, %arg0, %c1_i32_66 : i32
    %164 = arith.extui %163 : i1 to i32
    %c0_i32_67 = arith.constant 0 : i32
    %165 = arith.cmpi ne, %164, %c0_i32_67 : i32
    scf.if %165 {
      %c0_68 = arith.constant 0 : index
      %c0_69 = arith.constant 0 : index
      %166 = vector.load %arg5[%c0_68, %c0_69] : memref<32x1xf32, #tpu.memory_space<vmem>>, vector<32x1xf32>
      %cst_70 = arith.constant dense<0.000000e+00> : vector<8x1xf32>
      %167 = tpu.matmul %160, %166, %cst_70 {dimension_numbers = #tpu.dot_dimension_numbers<[1], [0], [0], [1], [0, 0, 1, 1], [], []>} : vector<8x32xf32>, vector<32x1xf32>, vector<8x1xf32> -> vector<8x1xf32>
      %c0_71 = arith.constant 0 : index
      %c0_72 = arith.constant 0 : index
      %168 = vector.load %arg6[%c0_71, %c0_72] : memref<1x1xf32, #tpu.memory_space<vmem>>, vector<1x1xf32>
      %169 = vector.broadcast %168 : vector<1x1xf32> to vector<8x1xf32>
      %170 = arith.addf %167, %169 : vector<8x1xf32>
      %c0_73 = arith.constant 0 : index
      %c0_74 = arith.constant 0 : index
      %171 = vector.load %arg7[%c0_73, %c0_74] : memref<8x1xf32, #tpu.memory_space<vmem>>, vector<8x1xf32>
      tpu.vector_store %arg7[%c0_73, %c0_74], %170 {strides = array<i32>} : memref<8x1xf32, #tpu.memory_space<vmem>>, vector<8x1xf32>,
    } else {
    }
    return
  }
  func.func @transform_0(%arg0: i32) -> (i32, i32) {
    %c0_i32 = arith.constant 0 : i32
    %c0_i32_0 = arith.constant 0 : i32
    return %arg0, %c0_i32 : i32, i32
  }
  func.func @transform_1(%arg0: i32) -> (i32, i32) {
    %c0_i32 = arith.constant 0 : i32
    %c0_i32_0 = arith.constant 0 : i32
    %c0_i32_1 = arith.constant 0 : i32
    return %c0_i32, %c0_i32_0 : i32, i32
  }
  func.func @transform_2(%arg0: i32) -> (i32, i32) {
    %c0_i32 = arith.constant 0 : i32
    %c0_i32_0 = arith.constant 0 : i32
    %c0_i32_1 = arith.constant 0 : i32
    return %c0_i32, %c0_i32_0 : i32, i32
  }
  func.func @transform_3(%arg0: i32) -> (i32, i32) {
    %c0_i32 = arith.constant 0 : i32
    %c0_i32_0 = arith.constant 0 : i32
    %c0_i32_1 = arith.constant 0 : i32
    return %c0_i32, %c0_i32_0 : i32, i32
  }
  func.func @transform_4(%arg0: i32) -> (i32, i32) {
    %c0_i32 = arith.constant 0 : i32
    %c0_i32_0 = arith.constant 0 : i32
    %c0_i32_1 = arith.constant 0 : i32
    return %c0_i32, %c0_i32_0 : i32, i32
  }
  func.func @transform_5(%arg0: i32) -> (i32, i32) {
    %c0_i32 = arith.constant 0 : i32
    %c0_i32_0 = arith.constant 0 : i32
    %c0_i32_1 = arith.constant 0 : i32
    return %c0_i32, %c0_i32_0 : i32, i32
  }
  func.func @transform_6(%arg0: i32) -> (i32, i32) {
    %c0_i32 = arith.constant 0 : i32
    %c0_i32_0 = arith.constant 0 : i32
    %c0_i32_1 = arith.constant 0 : i32
    return %c0_i32, %c0_i32_0 : i32, i32
  }
}

</mosaic_0001>

<bundles_post_ra>
// kernel: lstm_model_forward.1
= control target key start
LH: loop header
LB: loop body
LE: loop exit
PB: predicated region body
PF: predicated region fallthrough
CT: control target
= control target key end

     0   :  { %s1144_s23 = smov 0   ;;  %s1254_s0 = inlined_call_operand.vmem [shape: f32[64,4], index: 0, kind: input, shape index: {}]   ;;  %s1255_s1 = inlined_call_operand.vmem [shape: f32[4,128], index: 1, kind: input, shape index: {}]   ;;  %s1256_s2 = inlined_call_operand.vmem [shape: f32[32,128], index: 2, kind: input, shape index: {}]   ;;  %s1257_s3 = inlined_call_operand.vmem [shape: f32[1,128], index: 3, kind: input, shape index: {}]   ;;  %s1258_s4 = inlined_call_operand.vmem [shape: f32[32,1], index: 4, kind: input, shape index: {}]   ;;  %s1259_s5 = inlined_call_operand.<no memory space> [shape: f32[1,1], index: 5, kind: input, shape index: {}]   ;;  %s1260_s6 = inlined_call_operand.vmem [shape: f32[8,1], index: 6, kind: output, shape index: {}]  }
   0x1   :  { %v11_v0 = vstv %s1259_s5 }
   0x2   :  { %12 = vst [vmem:[#allocation5] sm:$0x1] %v11_v0 }
   0x3 LB: > { %s1150_s24 = sadd.s32 4294967295, %s1094_s23   ;;  %p904_p0 = scmp.ge.s32.totalorder %s1094_s23, 1  ;;  %s1094_s23 = sphi %s1144_s23, %s18_s23  }
   0x4   : > { %p210_p1 = scmp.lt.s32.totalorder %s1094_s23, 3 }
   0x6   : > { %p211_p2 = pnand %p904_p0, %p210_p1 }
   0x7   : > { %s905_s25 = sshll.u32 (!%p211_p2), %s1150_s24, 2  ;;  %p907_p4 = scmp.ne.s32.totalorder (!%p211_p2), %s1150_s24, 0 }
   0x8   : > { %214 = sbr.rel (%p211_p2) target bundleno = 3056 (0xbf0), region = 44  ;;  %p236_p3 = scmp.lt.s32.totalorder (!%p211_p2), %s905_s25, 7 }
   0xf   : > { %s1262_s25 = smov (!%p236_p3, %s905_s25), 7  ;;  %244 = sbr.rel (%p907_p4) target bundleno = 22 (0x16), region = 48 }
  0x10   : > { %s906_s5 = sshll.u32 %s1262_s25, 3  ;;  %vm245_vm0 = vcmask (!%p907_p4), 261120   ;;  %v1096_v1 = vmov (!%p907_p4), 0.0  }
  0x11   : > { %s1158_s28 = scalar_lea.vmem %s1254_s0, %s906_s5  ;;  %246 = vst.msk [vmem:[#allocation3] sm:$0xff] (!%p907_p4), %vm245_vm0, %v1096_v1  ;;  %247 = vst.msk [vmem:[#allocation4] sm:$0xff] (!%p907_p4), %vm245_vm0, %v1096_v1 }
  0x16 PF: > { %v366_v2 = vld [vmem:[%s1256_s2] sm:$0xff]  ;;  %v367_v3 = vld [vmem:[%s1256_s2 + $0x8] sm:$0xff]  ;;  %vm273_vm1 = vcmask 1043456   ;;  %v1097_v5 = vmov 0.0|0.0   ;;  %vm260_vm2 = vcmask 31744   ;;  %v368_v9 = vld [vmem:[%s1256_s2 + $0x10] sm:$0xff] }
  0x17   : > { %v252_v4 = vld [vmem:[%s1255_s1] sm:$0xf]  ;;  %1016 = vmatprep.subr.bf16.mxu1 %v1097_v5  ;;  %v1171_v6 = vpack.c.bf16 %v367_v3, %v366_v2  ;;  %v249_v8 = vld [vmem:[%s1158_s28 + $0x8] sm:$0xff]  ;;  %v369_v10 = vld [vmem:[%s1256_s2 + $0x18] sm:$0xff]  ;;  %vm1098_vm3 = vmmov 0   ;;  %v1099_v12 = vmov 0.0  }
  0x18   : > { %953 = vmatprep.subr.msk.mxu0 %vm273_vm1, %v252_v4  ;;  %v248_v7 = vld [vmem:[%s1158_s28] sm:$0xff]  ;;  %v1020_v11 = vpack.c.bf16 %v369_v10, %v368_v9  ;;  %969 = vmatprep.mubr.msk.f32.mxu1 %vm1098_vm3, %v1099_v12  ;;  %vm373_vm4 = vcmask 261120   ;;  %s1100_s17 = smov 64   ;;  %v371_v22 = vld [vmem:[#allocation4] sm:$0xff]  ;;  %s1101_s18 = smov 32   ;;  %v250_v33 = vld [vmem:[%s1158_s28 + $0x10] sm:$0xff] }
  0x19   : > { %954 = vmatpush3.msk.msra.mxu0 %vm273_vm1, %v252_v4  ;;  %955 = vmatprep.mubr.msk.f32.mxu0 %vm260_vm2, %v248_v7  ;;  %v370_v13 = vld [vmem:[#allocation3] sm:$0xff]  ;;  %v251_v34 = vld [vmem:[%s1158_s28 + $0x18] sm:$0xff]  ;;  %s1102_s19 = smov 96   ;;  %p918_p5 = scmp.ne.s32.totalorder %s1150_s24, 1 }
  0x1a   : > { %1018 = vmatpush3.bf16.msra.mxu1 %v1171_v6  ;;  %956 = vmatmul.mubr.msk.f32.vlgmr.msra.gmra.mrb[0].mxu0 %vm260_vm2, %v249_v8  ;;  %v1198_v15 = vld [vmem:[%s1257_s3] ss:$0 sm:$0xff]  ;;  %vm1104_vm5 = vmmov (!%p918_p5), 0   ;;  %vm871_vm6 = vcmask (!%p918_p5), 7168  }
  0x1b   : > { %1019 = vmatprep.subr.bf16.mxu1 %v1097_v5  ;;  %1022 = vmatprep.subr.bf16.mxu0 %v1097_v5 }
  0x1c   : > { %1024 = vmatpush3.bf16.msra.mxu0 %v1171_v6  ;;  %958 = vmatprep.mubr.msk.f32.mxu0 %vm260_vm2, %v250_v33  ;;  %v789_v33 = vld [vmem:[%s1258_s4 + $0x8] sm:$0xff] (!%p918_p5) }
  0x1d   : > { %1025 = vmatprep.subr.bf16.mxu0 %v1097_v5 }
  0x1e   : > { %1021 = vmatpush3.bf16.msra.mxu1 %v1020_v11  ;;  %959 = vmatmul.mubr.msk.f32.gmra.mrb[2].mxu0 %vm260_vm2, %v251_v34  ;;  %v790_v34 = vld [vmem:[%s1258_s4 + $0x10] sm:$0xff] (!%p918_p5) }
  0x1f   : > { %1028 = vmatprep.subr.bf16.mxu1 %v1097_v5  ;;  %980 = vmatprep.mubr.msk.f32.mxu0 %vm1098_vm3, %v1099_v12 }
  0x20   : > { %1027 = vmatpush3.bf16.msra.mxu0 %v1020_v11 }
  0x21   : > { %970 = vmatmul.mubr.msk.f32.vlgmr.msra.gmra.mrb[0].mxu1 %vm373_vm4, %v370_v13  ;;  %1034 = vmatprep.subr.bf16.mxu0 %v1097_v5 }
  0x22   : > { %1030 = vmatpush3.bf16.msra.mxu1 %v1171_v6  ;;  %991 = vmatprep.mubr.msk.f32.mxu1 %vm1098_vm3, %v1099_v12 }
  0x23   : > { %1031 = vmatprep.subr.bf16.mxu1 %v1097_v5 }
  0x26   : > { %1033 = vmatpush3.bf16.msra.mxu1 %v1020_v11 }
  0xed   : > { %v957_v14 = vpop.f32.mrb[0].mxu0 }
  0xee   : > { %v343_v16 = vpop.f32.mrb[1].mxu0  ;;  %v349_v41 = vadd.f32 %v957_v14, %v1198_v15 }
  0xef   : > { %v344_v17 = vadd.f32 %v1198_v15, %v343_v16 }
  0xf1   : > { %v960_v38 = vpop.f32.mrb[2].mxu0 }
  0xf2   : > { %v353_v39 = vpop.f32.mrb[3].mxu0  ;;  %v359_v13 = vadd.f32 %v960_v38, %v1198_v15  ;;  %v1105_v38 = vmov (!%p918_p5), 0.0  }
  0xf3   : > { %v354_v59 = vadd.f32 %v1198_v15, %v353_v39 }
  0xf4   : > { %v443_v18 = vpop.f32.mrb[0].mxu1 }
  0xf5   : > { %v447_v19 = vadd.f32 %v443_v18, %v344_v17  ;;  %v971_v20 = vpop.f32.mrb[1].mxu1 }
  0xf7   : > { %1064 = vtanh.f32 %v447_v19  ;;  %v448_v23 = vmul.f32 0.5, %v447_v19 }
  0xf9   : > { %1066 = vtanh.f32 %v448_v23 }
 0x101   : > { %v1065_v21 = vpop.eup %1064 }
 0x102   : > { %459 = vrot.lane.b32.xlu0 %v1065_v21, %s1100_s17 }
 0x103   : > { %v1067_v24 = vpop.eup %1066 }
 0x104   : > { %v450_v25 = vmul.f32 0.5, %v1067_v24 }
 0x106   : > { %454 = vrot.lane.b32.xlu0 %v371_v22, %s1101_s18  ;;  %v451_v26 = vadd.f32 0.5, %v450_v25 }
 0x174   : > { %v460_v27 = vpop.permute.xlu0 %459 }
 0x175   : > { %v462_v28 = vmul.f32 %v460_v27, %v451_v26 }
 0x177   : > { %464 = vrot.lane.b32.xlu1 %v462_v28, %s1101_s18 }
 0x178   : > { %v455_v29 = vpop.permute.xlu0 %454 }
 0x179   : > { %v457_v30 = vmul.f32 %v455_v29, %v451_v26 }
 0x1e9   : > { %v465_v31 = vpop.permute.xlu1 %464 }
 0x1ea   : > { %v467_v32 = vadd.f32 %v465_v31, %v457_v30 }
 0x1ec   : > { %1068 = vtanh.f32 %v467_v32 }
 0x1f6   : > { %v1069_v35 = vpop.eup %1068 }
 0x1f7   : > { %470 = vrot.lane.b32.xlu1 %v1069_v35, %s1100_s17  ;;  %v1103_v35 = vmov (!%p918_p5), 0.0|0.0  }
 0x269   : > { %v471_v36 = vpop.permute.xlu1 %470 }
 0x26a   : > { %v473_v37 = vmul.f32 %v471_v36, %v451_v26 }
 0x26c   : > { %477 = vrot.lane.b32.xlu0 %v473_v37, %s1101_s18  ;;  %v791_v37 = vld [vmem:[%s1258_s4 + $0x18] sm:$0xff] (!%p918_p5) }
 0x26d   : > { %v1044_v39 = vpack.c.bf16 (!%p918_p5), %v791_v37, %v790_v34 }
 0x2de   : > { %v478_v40 = vpop.permute.xlu0 %477 }
 0x2df   : > { %981 = vmatmul.mubr.msk.f32.vlgmr.msra.gmra.mrb[4].mxu0 %vm373_vm4, %v478_v40  ;;  %v919_v40 = vld [vmem:[#allocation5] ss:$0 sm:$0xff] (!%p918_p5) }
 0x2e0   : > { %1036 = vmatpush3.bf16.msra.mxu0 %v1171_v6  ;;  %1002 = vmatprep.mubr.msk.f32.mxu0 %vm1098_vm3, %v1099_v12 }
 0x2e1   : > { %1037 = vmatprep.subr.bf16.mxu0 %v1097_v5 }
 0x2e4   : > { %1039 = vmatpush3.bf16.msra.mxu0 %v1020_v11 }
 0x2e5   : > { %1040 = vmatprep.subr.bf16.mxu0 (!%p918_p5), %v1103_v35 }
 0x3b2   : > { %v547_v42 = vpop.f32.mrb[4].mxu0 }
 0x3b3   : > { %v551_v43 = vadd.f32 %v547_v42, %v349_v41  ;;  %v982_v44 = vpop.f32.mrb[5].mxu0 }
 0x3b5   : > { %1070 = vtanh.f32 %v551_v43  ;;  %v552_v46 = vmul.f32 0.5, %v551_v43 }
 0x3b7   : > { %1072 = vtanh.f32 %v552_v46 }
 0x3bf   : > { %v1071_v45 = vpop.eup %1070 }
 0x3c0   : > { %559 = vrot.lane.b32.xlu1 %v1071_v45, %s1100_s17 }
 0x3c1   : > { %v1073_v47 = vpop.eup %1072 }
 0x3c2   : > { %v554_v48 = vmul.f32 0.5, %v1073_v47 }
 0x3c4   : > { %v555_v49 = vadd.f32 0.5, %v554_v48 }
 0x3c6   : > { %v557_v52 = vmul.f32 %v555_v49, %v467_v32  ;;  %v788_v32 = vld [vmem:[%s1258_s4] sm:$0xff] (!%p918_p5) }
 0x3c7   : > { %v1041_v36 = vpack.c.bf16 (!%p918_p5), %v789_v33, %v788_v32 }
 0x432   : > { %v560_v50 = vpop.permute.xlu1 %559 }
 0x433   : > { %v562_v51 = vmul.f32 %v560_v50, %v555_v49 }
 0x435   : > { %564 = vrot.lane.b32.xlu0 %v562_v51, %s1101_s18 }
 0x4a7   : > { %v565_v53 = vpop.permute.xlu0 %564 }
 0x4a8   : > { %v567_v54 = vadd.f32 %v565_v53, %v557_v52 }
 0x4aa   : > { %1074 = vtanh.f32 %v567_v54 }
 0x4b4   : > { %v1075_v55 = vpop.eup %1074 }
 0x4b5   : > { %570 = vrot.lane.b32.xlu1 %v1075_v55, %s1100_s17 }
 0x527   : > { %v571_v56 = vpop.permute.xlu1 %570 }
 0x528   : > { %v573_v57 = vmul.f32 %v571_v56, %v555_v49 }
 0x52a   : > { %577 = vrot.lane.b32.xlu0 %v573_v57, %s1101_s18 }
 0x59c   : > { %v578_v58 = vpop.permute.xlu0 %577 }
 0x59d   : > { %992 = vmatmul.mubr.msk.f32.vlgmr.msra.gmra.mrb[2].mxu1 %vm373_vm4, %v578_v58 }
 0x670   : > { %v647_v60 = vpop.f32.mrb[2].mxu1 }
 0x671   : > { %v651_v61 = vadd.f32 %v647_v60, %v354_v59  ;;  %v993_v62 = vpop.f32.mrb[3].mxu1 }
 0x673   : > { %1076 = vtanh.f32 %v651_v61  ;;  %v652_v0 = vmul.f32 0.5, %v651_v61 }
 0x675   : > { %1078 = vtanh.f32 %v652_v0 }
 0x67d   : > { %v1077_v63 = vpop.eup %1076 }
 0x67e   : > { %659 = vrot.lane.b32.xlu1 %v1077_v63, %s1100_s17 }
 0x67f   : > { %v1079_v1 = vpop.eup %1078 }
 0x680   : > { %v654_v2 = vmul.f32 0.5, %v1079_v1 }
 0x682   : > { %v655_v3 = vadd.f32 0.5, %v654_v2 }
 0x684   : > { %v657_v6 = vmul.f32 %v655_v3, %v567_v54 }
 0x6f0   : > { %v660_v4 = vpop.permute.xlu1 %659 }
 0x6f1   : > { %v662_v5 = vmul.f32 %v660_v4, %v655_v3 }
 0x6f3   : > { %664 = vrot.lane.b32.xlu0 %v662_v5, %s1101_s18 }
 0x765   : > { %v665_v7 = vpop.permute.xlu0 %664 }
 0x766   : > { %v667_v8 = vadd.f32 %v665_v7, %v657_v6 }
 0x768   : > { %1080 = vtanh.f32 %v667_v8 }
 0x772   : > { %v1081_v9 = vpop.eup %1080 }
 0x773   : > { %670 = vrot.lane.b32.xlu1 %v1081_v9, %s1100_s17 }
 0x7e5   : > { %v671_v10 = vpop.permute.xlu1 %670 }
 0x7e6   : > { %v673_v11 = vmul.f32 %v671_v10, %v655_v3 }
 0x7e8   : > { %677 = vrot.lane.b32.xlu0 %v673_v11, %s1101_s18 }
 0x85a   : > { %v678_v12 = vpop.permute.xlu0 %677 }
 0x85b   : > { %1003 = vmatmul.mubr.msk.f32.vlgmr.msra.gmra.mrb[6].mxu0 %vm373_vm4, %v678_v12 }
 0x85c   : > { %1013 = vmatprep.mubr.msk.f32.mxu0 (!%p918_p5), %vm1104_vm5, %v1105_v38  ;;  %1042 = vmatpush3.bf16.msra.mxu0 (!%p918_p5), %v1041_v36 }
 0x85d   : > { %1043 = vmatprep.subr.bf16.mxu0 (!%p918_p5), %v1103_v35 }
 0x860   : > { %1045 = vmatpush3.bf16.msra.mxu0 (!%p918_p5), %v1044_v39 }
 0x92e   : > { %v747_v14 = vpop.f32.mrb[6].mxu0 }
 0x92f   : > { %v751_v16 = vadd.f32 %v747_v14, %v359_v13  ;;  %v1004_v17 = vpop.f32.mrb[7].mxu0 }
 0x931   : > { %1082 = vtanh.f32 %v751_v16  ;;  %v752_v19 = vmul.f32 0.5, %v751_v16 }
 0x933   : > { %1084 = vtanh.f32 %v752_v19 }
 0x93b   : > { %v1083_v18 = vpop.eup %1082 }
 0x93c   : > { %759 = vrot.lane.b32.xlu1 %v1083_v18, %s1100_s17 }
 0x93d   : > { %v1085_v20 = vpop.eup %1084 }
 0x93e   : > { %v754_v21 = vmul.f32 0.5, %v1085_v20 }
 0x940   : > { %v755_v22 = vadd.f32 0.5, %v754_v21 }
 0x942   : > { %v757_v25 = vmul.f32 %v755_v22, %v667_v8 }
 0x9ae   : > { %v760_v23 = vpop.permute.xlu1 %759 }
 0x9af   : > { %v762_v24 = vmul.f32 %v760_v23, %v755_v22 }
 0x9b1   : > { %764 = vrot.lane.b32.xlu0 %v762_v24, %s1101_s18 }
 0xa23   : > { %v765_v26 = vpop.permute.xlu0 %764 }
 0xa24   : > { %v767_v27 = vadd.f32 %v765_v26, %v757_v25 }
 0xa26   : > { %1086 = vtanh.f32 %v767_v27 }
 0xa30   : > { %v1087_v15 = vpop.eup %1086 }
 0xa31   : > { %770 = vrot.lane.b32.xlu1 %v1087_v15, %s1100_s17 }
 0xa35   : > { %780 = vrot.lane.b32.xlu1 %v767_v27, %s1102_s19 }
 0xaa3   : > { %v771_v28 = vpop.permute.xlu1 %770 }
 0xaa4   : > { %v773_v29 = vmul.f32 %v771_v28, %v755_v22 }
 0xaa6   : > { %775 = vrot.lane.b32.xlu0 %v773_v29, %s1101_s18 }
 0xaa7   : > { %v781_v30 = vpop.permute.xlu1 %780 }
 0xaa8   : > { %783 = vst.msk [vmem:[#allocation4] sm:$0xff] %vm373_vm4, %v781_v30 }
 0xb13   : > { %787 = sbr.rel (%p918_p5) target bundleno = 3056 (0xbf0), region = 52 }
 0xb18   : > { %v776_v31 = vpop.permute.xlu0 %775 }
 0xb19   : > { %778 = vst.msk [vmem:[#allocation3] sm:$0xff] %vm373_vm4, %v776_v31  ;;  %1014 = vmatmul.mubr.msk.f32.vlgmr.msra.gmra.mrb[0].mxu0 (!%p918_p5), %vm373_vm4, %v776_v31 }
 0xbec   : > { %v867_v41 = vpop.f32.mrb[0].mxu0 }
 0xbed   : > { %v868_v42 = vadd.f32 %v919_v40, %v867_v41  ;;  %v1015_v43 = vpop.f32.mrb[1].mxu0 }
 0xbef   : > { %872 = vst.msk [vmem:[%s1260_s6] sm:$0xff] %vm871_vm6, %v868_v42 }
 0xbf0 PF: > { %s18_s23 = sadd.s32 1, %s1094_s23  }
 0xbf1   : > { %p15_p6 = scmp.ge.s32.totalorder %s18_s23, 4  }
 0xbf3   :  { %17 = sbr.rel (!%p15_p6) target bundleno = 3 (0x3), region = 81 }

</bundles_post_ra>
